<compile_context>
chip_gen: v6e
topology: v6e:2x2x1
jax: 0.10.0
libtpu: 0.0.40
codegen_flags: <defaults>
</compile_context>

<pallas_src>
import jax
import jax.numpy as jnp
import numpy as np
from jax.experimental import pallas as pl
from jax.experimental.pallas import tpu as pltpu

HIDDEN = 256


def _critic_math(xa_bf, w1, b1, w2, b2, w3_row_f32, b3_scalar):
    """One critic: relu(fc1([x|a])) -> relu(fc2) -> fc3 (VPU/XLU reduction).

    Returns q as a (tb,) vector (batch on the lane axis -> lane-dense store).
    """
    # fc1: single MXU pass (bf16 x bf16, f32 accumulate), bias/ReLU in f32.
    h1 = jnp.dot(xa_bf, w1, preferred_element_type=jnp.float32)
    h1 = jnp.maximum(h1 + b1, 0.0)
    # fc2
    h2 = jnp.dot(h1.astype(jnp.bfloat16), w2, preferred_element_type=jnp.float32)
    h2 = jnp.maximum(h2 + b2, 0.0)
    # fc3: N=1 matmul -> VPU multiply + lane-axis reduction (keeps the MXU free
    # and avoids a width-1 MXU pass).
    q = jnp.sum(h2 * w3_row_f32, axis=-1)          # (tb,)
    return q + b3_scalar


def _softq_kernel(x_ref, a_ref, w1_ref, b1_ref, w2_ref, b2_ref, w3_ref,
                  b3_ref, out_ref):
    # Fold the concat into VMEM (cheap lane shift), then cast once to bf16.
    xa = jnp.concatenate([x_ref[...], a_ref[...]], axis=-1).astype(jnp.bfloat16)
    q = _critic_math(xa, w1_ref[...], b1_ref[...], w2_ref[...], b2_ref[...],
                     w3_ref[...].astype(jnp.float32), b3_ref[0, 0])
    out_ref[...] = q.reshape(out_ref.shape).astype(out_ref.dtype)   # (1, tb)


def _softq_twin_kernel(x_ref, a_ref, w1_ref, b1_ref, w2_ref, b2_ref, w3_ref,
                       b3_ref, out_ref):
    # Critic index lives on grid axis 0 ("parallel" -> shards across TCs on v7x).
    k = pl.program_id(0)
    xa = jnp.concatenate([x_ref[...], a_ref[...]], axis=-1).astype(jnp.bfloat16)
    q = _critic_math(xa, w1_ref[...], b1_ref[...], w2_ref[...], b2_ref[...],
                     w3_ref[...].astype(jnp.float32), b3_ref[k, 0])
    out_ref[...] = q.reshape(out_ref.shape).astype(out_ref.dtype)   # (1, tb)


def _pinned(arr):
    """Weight block pinned across the batch grid (fetched once)."""
    nd = arr.ndim
    return pl.BlockSpec(arr.shape, lambda i: (0,) * nd)


def _cost(batch, in_dim, n_critics):
    flops = 2 * batch * (in_dim * HIDDEN + HIDDEN * HIDDEN + HIDDEN) * n_critics
    weight_bytes = (in_dim * HIDDEN + HIDDEN * HIDDEN + HIDDEN) * 2 * n_critics
    bias_bytes = (2 * HIDDEN + 1) * 4 * n_critics
    act_bytes = batch * in_dim * 4
    out_bytes = batch * n_critics * 4
    return pl.CostEstimate(flops=flops, transcendentals=0,
                           bytes_accessed=weight_bytes + bias_bytes + act_bytes + out_bytes)


def _vmem_kwargs(tb):
    # Only needed if block_b is pushed very high (v7x scoped default is 32 MiB).
    return {"vmem_limit_bytes": 48 * 1024 * 1024} if tb >= 2048 else {}


def soft_q_forward(x, a, kernel_params, *, block_b=1024):
    """x: (B, obs_dim), a: (B, act_dim) -> q: (B, 1)."""
    w1, b1, w2, b2, w3r, b3 = kernel_params
    B, obs_dim = x.shape
    act_dim = a.shape[1]
    tb = B if B <= block_b else block_b
    grid = (pl.cdiv(B, tb),)

    out = pl.pallas_call(
        _softq_kernel,
        out_shape=jax.ShapeDtypeStruct((1, B), jnp.float32),   # lane-dense
        grid=grid,
        in_specs=[
            pl.BlockSpec((tb, obs_dim), lambda i: (i, 0)),
            pl.BlockSpec((tb, act_dim), lambda i: (i, 0)),
            _pinned(w1), _pinned(b1), _pinned(w2), _pinned(b2), _pinned(w3r),
            pl.BlockSpec(memory_space=pltpu.MemorySpace.SMEM),   # b3 scalar
        ],
        out_specs=pl.BlockSpec((1, tb), lambda i: (0, i)),
        compiler_params=pltpu.CompilerParams(
            dimension_semantics=("parallel",), **_vmem_kwargs(tb)),
        cost_estimate=_cost(B, obs_dim + act_dim, n_critics=1),
    )(x, a, w1, b1, w2, b2, w3r, b3)
    return out.reshape(B, 1)


def soft_q_forward_twin(x, a, kernel_params_1, kernel_params_2, *, block_b=1024):
    """Fused SAC twin critics in a single pallas_call. Returns (q1, q2).

    Critic index is a leading "parallel" grid axis so v7x runs one critic per
    TensorCore; weights are selected per-critic via the index_map.
    """
    stacked = [jnp.stack([p1, p2]) for p1, p2 in zip(kernel_params_1, kernel_params_2)]
    w1, b1, w2, b2, w3r, b3 = stacked
    b3 = b3.reshape(2, 1)                      # (2, 1) scalar table in SMEM
    B, obs_dim = x.shape
    act_dim = a.shape[1]
    in_dim = obs_dim + act_dim
    tb = B if B <= block_b else block_b
    grid = (2, pl.cdiv(B, tb))                 # (critic, batch-tile)

    out = pl.pallas_call(
        _softq_twin_kernel,
        out_shape=jax.ShapeDtypeStruct((2, 1, B), jnp.float32),  # lane-dense
        grid=grid,
        in_specs=[
            pl.BlockSpec((tb, obs_dim), lambda k, i: (i, 0)),
            pl.BlockSpec((tb, act_dim), lambda k, i: (i, 0)),
            # Per-critic weight blocks (critic dim squeezed out of the kernel view).
            pl.BlockSpec((None, in_dim, HIDDEN), lambda k, i: (k, 0, 0)),
            pl.BlockSpec((None, 1, HIDDEN), lambda k, i: (k, 0, 0)),
            pl.BlockSpec((None, HIDDEN, HIDDEN), lambda k, i: (k, 0, 0)),
            pl.BlockSpec((None, 1, HIDDEN), lambda k, i: (k, 0, 0)),
            pl.BlockSpec((None, 1, HIDDEN), lambda k, i: (k, 0, 0)),
            pl.BlockSpec(memory_space=pltpu.MemorySpace.SMEM),   # b3 table
        ],
        out_specs=pl.BlockSpec((None, 1, tb), lambda k, i: (k, 0, i)),
        compiler_params=pltpu.CompilerParams(
            dimension_semantics=("parallel", "parallel"), **_vmem_kwargs(tb)),
        cost_estimate=_cost(B, in_dim, n_critics=2),
    )(x, a, w1, b1, w2, b2, w3r, b3)
    return out[0].reshape(B, 1), out[1].reshape(B, 1)


def init_params(key, obs_dim, act_dim):
    """PyTorch-style uniform(+/- 1/sqrt(fan_in)) init, weights stored (in, out)."""
    in_dim = obs_dim + act_dim
    dims = [(in_dim, HIDDEN), (HIDDEN, HIDDEN), (HIDDEN, 1)]
    params = []
    keys = jax.random.split(key, 2 * len(dims))
    for i, (fi, fo) in enumerate(dims):
        bound = 1.0 / np.sqrt(fi)
        w = jax.random.uniform(keys[2 * i], (fi, fo), jnp.float32, -bound, bound)
        b = jax.random.uniform(keys[2 * i + 1], (1, fo), jnp.float32, -bound, bound)
        params += [w, b]
    return tuple(params)


def prepare_params(params):
    """f32 (in,out) params -> kernel layout: bf16 weights, w3 as a lane-dense
    (1,256) row, b3 as (1,1) f32 for SMEM."""
    w1, b1, w2, b2, w3, b3 = params
    bf = jnp.bfloat16
    return (
        w1.astype(bf),                      # (in_dim, 256)
        b1,                                 # (1, 256) f32
        w2.astype(bf),                      # (256, 256)
        b2,                                 # (1, 256) f32
        w3.reshape(1, HIDDEN).astype(bf),   # (1, 256)
        b3.reshape(1, 1),                   # (1, 1) f32 (SMEM)
    )


def reference_forward_f32(x, a, params):
    """Exact original-module math in f32 (loose-tolerance sanity check)."""
    w1, b1, w2, b2, w3, b3 = params
    h = jnp.concatenate([x, a], axis=1)
    h = jax.nn.relu(h @ w1 + b1)
    h = jax.nn.relu(h @ w2 + b2)
    return h @ w3 + b3


def reference_forward_bf16(x, a, params):
    """Reference matching the kernel's numerics: bf16 MXU operands with f32
    accumulation, f32 bias/ReLU, fc3 in f32 with bf16-rounded w3."""
    w1, b1, w2, b2, w3, b3 = params
    bf = jnp.bfloat16
    h = jnp.concatenate([x, a], axis=1).astype(bf)
    h = jax.nn.relu(jnp.dot(h, w1.astype(bf), preferred_element_type=jnp.float32) + b1)
    h = jax.nn.relu(jnp.dot(h.astype(bf), w2.astype(bf), preferred_element_type=jnp.float32) + b2)
    return h @ w3.astype(bf).astype(jnp.float32) + b3


if __name__ == "__main__":
    key = jax.random.PRNGKey(0)
    k_x, k_a, k_p1, k_p2 = jax.random.split(key, 4)

    batch, obs_dim, act_dim = 2, 16, 8
    x = jax.random.normal(k_x, (batch, obs_dim), jnp.float32)
    a = jax.random.normal(k_a, (batch, act_dim), jnp.float32)

    params1 = init_params(k_p1, obs_dim, act_dim)
    params2 = init_params(k_p2, obs_dim, act_dim)
    kp1 = prepare_params(params1)
    kp2 = prepare_params(params2)

    # Single critic (matches SoftQNetwork.forward).
    q = jax.block_until_ready(soft_q_forward(x, a, kp1))
    assert q.shape == (batch, 1)

    q_ref = reference_forward_bf16(x, a, params1)
    np.testing.assert_allclose(np.asarray(q), np.asarray(q_ref), rtol=2e-3, atol=2e-3)
    q_f32 = reference_forward_f32(x, a, params1)
    np.testing.assert_allclose(np.asarray(q), np.asarray(q_f32), rtol=5e-2, atol=5e-2)

    # Fused SAC twin critics (one pallas_call for both Q-networks).
    q1, q2 = jax.block_until_ready(soft_q_forward_twin(x, a, kp1, kp2))
    np.testing.assert_allclose(np.asarray(q1), np.asarray(q_ref), rtol=2e-3, atol=2e-3)
    np.testing.assert_allclose(np.asarray(q2),
                               np.asarray(reference_forward_bf16(x, a, params2)),
                               rtol=2e-3, atol=2e-3)

    print("KERNEL_OK")
</pallas_src>

<mosaic_0001>
module attributes {stable_mosaic.version = 11 : i64} {
  func.func @_softq_kernel(%arg0: i32, %arg1: memref<2x16xf32, #tpu.memory_space<vmem>>, %arg2: memref<2x8xf32, #tpu.memory_space<vmem>>, %arg3: memref<24x256xbf16, #tpu.memory_space<vmem>>, %arg4: memref<1x256xf32, #tpu.memory_space<vmem>>, %arg5: memref<256x256xbf16, #tpu.memory_space<vmem>>, %arg6: memref<1x256xf32, #tpu.memory_space<vmem>>, %arg7: memref<1x256xbf16, #tpu.memory_space<vmem>>, %arg8: memref<1x1xf32, #tpu.memory_space<smem>>, %arg9: memref<1x2xf32, #tpu.memory_space<vmem>>) attributes {dimension_semantics = [#tpu.dimension_semantics<parallel>], iteration_bounds = array<i64: 1>, scalar_prefetch = 0 : i64, scratch_operands = 0 : i64, tpu.core_type = #tpu.core_type<tc>, window_params = [{transform_indices = @transform_0, window_bounds = array<i64: 2, 16>}, {transform_indices = @transform_1, window_bounds = array<i64: 2, 8>}, {pipeline_mode = #tpu.pipeline_mode<synchronous>, transform_indices = @transform_2, window_bounds = array<i64: 24, 256>}, {pipeline_mode = #tpu.pipeline_mode<synchronous>, transform_indices = @transform_3, window_bounds = array<i64: 1, 256>}, {pipeline_mode = #tpu.pipeline_mode<synchronous>, transform_indices = @transform_4, window_bounds = array<i64: 256, 256>}, {pipeline_mode = #tpu.pipeline_mode<synchronous>, transform_indices = @transform_5, window_bounds = array<i64: 1, 256>}, {pipeline_mode = #tpu.pipeline_mode<synchronous>, transform_indices = @transform_6, window_bounds = array<i64: 1, 256>}, {transform_indices = @transform_7, window_bounds = array<i64: 1, 1>}, {transform_indices = @transform_8, window_bounds = array<i64: 1, 2>}]} {
    %c0 = arith.constant 0 : index
    %c0_0 = arith.constant 0 : index
    %0 = vector.load %arg1[%c0, %c0_0] : memref<2x16xf32, #tpu.memory_space<vmem>>, vector<2x16xf32>
    %c0_1 = arith.constant 0 : index
    %c0_2 = arith.constant 0 : index
    %1 = vector.load %arg2[%c0_1, %c0_2] : memref<2x8xf32, #tpu.memory_space<vmem>>, vector<2x8xf32>
    %2 = tpu.concatenate %0, %1 in 1 : vector<2x16xf32>, vector<2x8xf32> -> vector<2x24xf32>
    %3 = arith.truncf %2 : vector<2x24xf32> to vector<2x24xbf16>
    %c0_3 = arith.constant 0 : index
    %c0_4 = arith.constant 0 : index
    %4 = vector.load %arg3[%c0_3, %c0_4] : memref<24x256xbf16, #tpu.memory_space<vmem>>, vector<24x256xbf16>
    %c0_5 = arith.constant 0 : index
    %c0_6 = arith.constant 0 : index
    %5 = vector.load %arg4[%c0_5, %c0_6] : memref<1x256xf32, #tpu.memory_space<vmem>>, vector<1x256xf32>
    %c0_7 = arith.constant 0 : index
    %c0_8 = arith.constant 0 : index
    %6 = vector.load %arg5[%c0_7, %c0_8] : memref<256x256xbf16, #tpu.memory_space<vmem>>, vector<256x256xbf16>
    %c0_9 = arith.constant 0 : index
    %c0_10 = arith.constant 0 : index
    %7 = vector.load %arg6[%c0_9, %c0_10] : memref<1x256xf32, #tpu.memory_space<vmem>>, vector<1x256xf32>
    %c0_11 = arith.constant 0 : index
    %c0_12 = arith.constant 0 : index
    %8 = vector.load %arg7[%c0_11, %c0_12] : memref<1x256xbf16, #tpu.memory_space<vmem>>, vector<1x256xbf16>
    %9 = arith.extf %8 : vector<1x256xbf16> to vector<1x256xf32>
    %c0_13 = arith.constant 0 : index
    %c0_14 = arith.constant 0 : index
    %10 = memref.load %arg8[%c0_13, %c0_14] : memref<1x1xf32, #tpu.memory_space<smem>>
    %cst = arith.constant dense<0.000000e+00> : vector<2x256xf32>
    %11 = tpu.matmul %3, %4, %cst {dimension_numbers = #tpu.dot_dimension_numbers<[1], [0], [0], [1], [0, 0, 1, 1], [], []>} : vector<2x24xbf16>, vector<24x256xbf16>, vector<2x256xf32> -> vector<2x256xf32>
    %12 = vector.broadcast %5 : vector<1x256xf32> to vector<2x256xf32>
    %13 = arith.addf %11, %12 : vector<2x256xf32>
    %cst_15 = arith.constant 0.000000e+00 : f32
    %14 = vector.broadcast %cst_15 : f32 to vector<2x256xf32>
    %15 = arith.maximumf %13, %14 : vector<2x256xf32>
    %16 = arith.truncf %15 : vector<2x256xf32> to vector<2x256xbf16>
    %cst_16 = arith.constant dense<0.000000e+00> : vector<2x256xf32>
    %17 = tpu.matmul %16, %6, %cst_16 {dimension_numbers = #tpu.dot_dimension_numbers<[1], [0], [0], [1], [0, 0, 1, 1], [], []>} : vector<2x256xbf16>, vector<256x256xbf16>, vector<2x256xf32> -> vector<2x256xf32>
    %18 = vector.broadcast %7 : vector<1x256xf32> to vector<2x256xf32>
    %19 = arith.addf %17, %18 : vector<2x256xf32>
    %cst_17 = arith.constant 0.000000e+00 : f32
    %20 = vector.broadcast %cst_17 : f32 to vector<2x256xf32>
    %21 = arith.maximumf %19, %20 : vector<2x256xf32>
    %22 = vector.broadcast %9 : vector<1x256xf32> to vector<2x256xf32>
    %23 = arith.mulf %21, %22 : vector<2x256xf32>
    %cst_18 = arith.constant dense<0.000000e+00> : vector<2xf32>
    %24 = vector.multi_reduction <add>, %23, %cst_18 [1] : vector<2x256xf32> to vector<2xf32>
    %25 = vector.broadcast %10 : f32 to vector<2xf32>
    %26 = arith.addf %24, %25 : vector<2xf32>
    %27 = vector.shape_cast %26 : vector<2xf32> to vector<1x2xf32>
    %c0_19 = arith.constant 0 : index
    %c0_20 = arith.constant 0 : index
    %28 = vector.load %arg9[%c0_19, %c0_20] : memref<1x2xf32, #tpu.memory_space<vmem>>, vector<1x2xf32>
    tpu.vector_store %arg9[%c0_19, %c0_20], %27 {strides = array<i32>} : memref<1x2xf32, #tpu.memory_space<vmem>>, vector<1x2xf32>,
    return
  }
  func.func @transform_0(%arg0: i32) -> (i32, i32) {
    %c0_i32 = arith.constant 0 : i32
    %c0_i32_0 = arith.constant 0 : i32
    return %arg0, %c0_i32 : i32, i32
  }
  func.func @transform_1(%arg0: i32) -> (i32, i32) {
    %c0_i32 = arith.constant 0 : i32
    %c0_i32_0 = arith.constant 0 : i32
    return %arg0, %c0_i32 : i32, i32
  }
  func.func @transform_2(%arg0: i32) -> (i32, i32) {
    %c0_i32 = arith.constant 0 : i32
    %c0_i32_0 = arith.constant 0 : i32
    %c0_i32_1 = arith.constant 0 : i32
    return %c0_i32, %c0_i32_0 : i32, i32
  }
  func.func @transform_3(%arg0: i32) -> (i32, i32) {
    %c0_i32 = arith.constant 0 : i32
    %c0_i32_0 = arith.constant 0 : i32
    %c0_i32_1 = arith.constant 0 : i32
    return %c0_i32, %c0_i32_0 : i32, i32
  }
  func.func @transform_4(%arg0: i32) -> (i32, i32) {
    %c0_i32 = arith.constant 0 : i32
    %c0_i32_0 = arith.constant 0 : i32
    %c0_i32_1 = arith.constant 0 : i32
    return %c0_i32, %c0_i32_0 : i32, i32
  }
  func.func @transform_5(%arg0: i32) -> (i32, i32) {
    %c0_i32 = arith.constant 0 : i32
    %c0_i32_0 = arith.constant 0 : i32
    %c0_i32_1 = arith.constant 0 : i32
    return %c0_i32, %c0_i32_0 : i32, i32
  }
  func.func @transform_6(%arg0: i32) -> (i32, i32) {
    %c0_i32 = arith.constant 0 : i32
    %c0_i32_0 = arith.constant 0 : i32
    %c0_i32_1 = arith.constant 0 : i32
    return %c0_i32, %c0_i32_0 : i32, i32
  }
  func.func @transform_7(%arg0: i32) -> (i32, i32) {
    %c0_i32 = arith.constant 0 : i32
    %c0_i32_0 = arith.constant 0 : i32
    %c0_i32_1 = arith.constant 0 : i32
    return %c0_i32, %c0_i32_0 : i32, i32
  }
  func.func @transform_8(%arg0: i32) -> (i32, i32) {
    %c0_i32 = arith.constant 0 : i32
    %c0_i32_0 = arith.constant 0 : i32
    return %c0_i32, %arg0 : i32, i32
  }
}

</mosaic_0001>

<bundles_post_ra>
// kernel: tpu_custom_call.1
= control target key start
LH: loop header
LB: loop body
LE: loop exit
PB: predicated region body
PF: predicated region fallthrough
CT: control target
= control target key end

     0   :  { %14 = vsyncpa [#allocation4], 0  ;;  %s736_s0 = inlined_call_operand.vmem [shape: f32[2,16], index: 0, kind: input, shape index: {}]   ;;  %s737_s1 = inlined_call_operand.hbm [shape: f32[2,8], index: 1, kind: input, shape index: {}]   ;;  %s738_s2 = inlined_call_operand.hbm [shape: bf16[24,256], index: 2, kind: input, shape index: {}]   ;;  %s739_s3 = inlined_call_operand.vmem [shape: f32[1,256], index: 3, kind: input, shape index: {}]   ;;  %s740_s4 = inlined_call_operand.hbm [shape: bf16[256,256], index: 4, kind: input, shape index: {}]   ;;  %s741_s5 = inlined_call_operand.vmem [shape: f32[1,256], index: 5, kind: input, shape index: {}]   ;;  %s742_s6 = inlined_call_operand.vmem [shape: bf16[1,256], index: 6, kind: input, shape index: {}]   ;;  %s743_s7 = inlined_call_operand.<no memory space> [shape: f32[1,1], index: 7, kind: input, shape index: {}]   ;;  %s744_s8 = inlined_call_operand.hbm [shape: f32[1,2], index: 8, kind: output, shape index: {}]  }
   0x1   :  { %15 = vsyncpa [#allocation7], 0 }
   0x2   :  { %16 = vsyncpa [#allocation5], 0  ;;  %s656_s27 = smov [#allocation6]  }
   0x3   :  { %s34_s28 = sshll.u32 %s656_s27, 4  ;;  %s35_s28 = int_to_ptr.vmem [resolvable:$true] %s34_s28 }
   0x4   :  { %s578_s29 = scalar_lea.vmem %s35_s28, 384  ;;  %p583_p1 = scmp.lt.s32.totalorder %s35_s28, %s35_s28 }
   0x5   :  { %p579_p0 = scmp.ne.s32.totalorder %s35_s28, %s578_s29  ;;  %p584_p2 = scmp.lt.s32.totalorder %s578_s29, %s578_s29 }
   0x7   :  { %p585_p3 = por %p584_p2, %p583_p1 }
   0x9   :  { %p586_p4 = pnand %p585_p3, %p579_p0 }
   0xb   :  { %589 = shalt.err (!%p586_p4)
}
   0xc   :  { %s657_s30 = smov 128   ;;  %s658_s9 = smov 8  }
   0xd   :  { %40 = dma.hbm_to_vmem [thread:$0]  %s738_s2, 384, %s35_s28, [#allocation7], %s657_s30, %s657_s30, %s658_s9  }
   0xe   :  { %s659_s12 = smov [#allocation3]   ;;  %s660_s14 = smov [#allocation8]  }
   0xf   :  { %s25_s13 = sshll.u32 %s659_s12, 4  ;;  %s48_s15 = sshll.u32 %s660_s14, 4  ;;  %s26_s13 = int_to_ptr.vmem [resolvable:$true] %s25_s13  ;;  %s49_s15 = int_to_ptr.vmem [resolvable:$true] %s48_s15 }
  0x10   :  { %s598_s16 = scalar_lea.vmem %s26_s13, 32  ;;  %p603_p6 = scmp.lt.s32.totalorder %s26_s13, %s26_s13 }
  0x11   :  { %p599_p5 = scmp.ne.s32.totalorder %s26_s13, %s598_s16  ;;  %p604_p7 = scmp.lt.s32.totalorder %s598_s16, %s598_s16 }
  0x13   :  { %p605_p8 = por %p604_p7, %p603_p6 }
  0x15   :  { %p606_p9 = pnand %p605_p8, %p599_p5 }
  0x17   :  { %609 = shalt.err (!%p606_p9)
}
  0x18   :  { %28 = dma.hbm_to_vmem [thread:$0]  %s737_s1, 32, %s26_s13, [#allocation4]  }
  0x19   :  { %s618_s19 = scalar_lea.vmem %s49_s15, 4096  ;;  %p623_p11 = scmp.lt.s32.totalorder %s49_s15, %s49_s15 }
  0x1a   :  { %p619_p10 = scmp.ne.s32.totalorder %s49_s15, %s618_s19  ;;  %p624_p12 = scmp.lt.s32.totalorder %s618_s19, %s618_s19 }
  0x1c   :  { %p625_p13 = por %p624_p12, %p623_p11 }
  0x1e   :  { %p626_p0 = pnand %p625_p13, %p619_p10 }
  0x20   :  { %629 = shalt.err (!%p626_p0)
}
  0x21   :  { %54 = dma.hbm_to_vmem [thread:$0]  %s740_s4, 4096, %s49_s15, [#allocation7], %s657_s30, %s657_s30, %s658_s9  }
  0x22   :  { %650 = dma.done.wait [#allocation4], 32  }
  0x23   :  { %651 = vsyncadd [#allocation4], 4294967264 }
  0x24   :  { %652 = dma.done.wait [#allocation7], 4480  }
  0x25   :  { %653 = vsyncadd [#allocation7], 4294962816  ;;  %v661_v0 = vmov 0   ;;  %v72_v1 = vld [vmem:[#allocation3] sm:$0x3]  ;;  %v82_v2 = vld [vmem:[#allocation6 + $0x10] sm:$0xff]  ;;  %v121_v44 = vlaneseq }
  0x26   :  { %189 = vmatprep.mubr.bf16.mxu0 %v661_v0  ;;  %vm150_vm0 = vcmask 1043456   ;;  %s662_s1 = smov 16   ;;  %v474_v3 = vcombine.high %v82_v2, %v82_v2  ;;  %v473_v4 = vcombine.low %v82_v2, %v82_v2  ;;  %v519_v5 = vld [vmem:[#allocation6 + $0x4] ss:$8 sps:$4 sm:$0xff]   ;;  %v524_v8 = vld [vmem:[#allocation8 + $0x70] ss:$8 sps:$4 sm:$0xff]  }
  0x27   :  { %74 = vrot.lane.b32.xlu0 %v72_v1, %s662_s1  ;;  %v522_v7 = vld [vmem:[#allocation8 + $0x74] ss:$8 sps:$4 sm:$0xff]   ;;  %v521_v9 = vld [vmem:[#allocation6] ss:$8 sps:$4 sm:$0xff]   ;;  %v525_v10 = vld [vmem:[#allocation8 + $0x64] ss:$8 sps:$4 sm:$0xff]  }
  0x28   :  { %475 = vmatprep.subr.msk.bf16.mxu0 %vm150_vm0, %v474_v3  ;;  %v152_v6 = vsel %vm150_vm0, %v473_v4, 0  ;;  %373 = vmatprep.subr.bf16.mxu1 %v522_v7  ;;  %v527_v11 = vld [vmem:[#allocation8 + $0x60] ss:$8 sps:$4 sm:$0xff]   ;;  %v528_v12 = vld [vmem:[#allocation8 + $0x54] ss:$8 sps:$4 sm:$0xff]   ;;  %vm77_vm1 = vcmask 130048  }
  0x29   :  { %170 = vmatpush1.bf16.msra.mxu0 %v152_v6  ;;  %374 = vmatpush1.bf16.msra.mxu1 %v524_v8  ;;  %v530_v13 = vld [vmem:[#allocation8 + $0x50] ss:$8 sps:$4 sm:$0xff]   ;;  %v531_v14 = vld [vmem:[#allocation8 + $0x44] ss:$8 sps:$4 sm:$0xff]   ;;  %v533_v15 = vld [vmem:[#allocation8 + $0x40] ss:$8 sps:$4 sm:$0xff]  }
  0x2a   :  { %171 = vmatprep.subr.bf16.mxu0 %v519_v5  ;;  %375 = vmatprep.subr.bf16.mxu1 %v525_v10  ;;  %v534_v16 = vld [vmem:[#allocation8 + $0x34] ss:$8 sps:$4 sm:$0xff]   ;;  %v536_v17 = vld [vmem:[#allocation8 + $0x30] ss:$8 sps:$4 sm:$0xff]   ;;  %v537_v18 = vld [vmem:[#allocation8 + $0x24] ss:$8 sps:$4 sm:$0xff]  }
  0x2b   :  { %v539_v19 = vld [vmem:[#allocation8 + $0x20] ss:$8 sps:$4 sm:$0xff]   ;;  %v540_v20 = vld [vmem:[#allocation8 + $0x14] ss:$8 sps:$4 sm:$0xff]   ;;  %v542_v21 = vld [vmem:[#allocation8 + $0x10] ss:$8 sps:$4 sm:$0xff]  }
  0x2c   :  { %v543_v22 = vld [vmem:[#allocation8 + $0x4] ss:$8 sps:$4 sm:$0xff]   ;;  %v545_v23 = vld [vmem:[#allocation8] ss:$8 sps:$4 sm:$0xff]   ;;  %v546_v24 = vld [vmem:[#allocation8 + $0xf4] ss:$8 sps:$4 sm:$0xff]  }
  0x2d   :  { %172 = vmatpush1.bf16.msra.mxu0 %v521_v9  ;;  %376 = vmatpush1.bf16.msra.mxu1 %v527_v11  ;;  %v548_v25 = vld [vmem:[#allocation8 + $0xf0] ss:$8 sps:$4 sm:$0xff]   ;;  %v549_v26 = vld [vmem:[#allocation8 + $0xe4] ss:$8 sps:$4 sm:$0xff]   ;;  %v551_v27 = vld [vmem:[#allocation8 + $0xe0] ss:$8 sps:$4 sm:$0xff]  }
  0x2e   :  { %377 = vmatprep.subr.bf16.mxu1 %v528_v12  ;;  %v552_v28 = vld [vmem:[#allocation8 + $0xd4] ss:$8 sps:$4 sm:$0xff]   ;;  %v554_v29 = vld [vmem:[#allocation8 + $0xd0] ss:$8 sps:$4 sm:$0xff]   ;;  %v555_v30 = vld [vmem:[#allocation8 + $0xc4] ss:$8 sps:$4 sm:$0xff]  }
  0x2f   :  { %v557_v31 = vld [vmem:[#allocation8 + $0xc0] ss:$8 sps:$4 sm:$0xff]   ;;  %v558_v32 = vld [vmem:[#allocation8 + $0xb4] ss:$8 sps:$4 sm:$0xff]   ;;  %v560_v33 = vld [vmem:[#allocation8 + $0xb0] ss:$8 sps:$4 sm:$0xff]  }
  0x30   :  { %v561_v34 = vld [vmem:[#allocation8 + $0xa4] ss:$8 sps:$4 sm:$0xff]   ;;  %v563_v35 = vld [vmem:[#allocation8 + $0xa0] ss:$8 sps:$4 sm:$0xff]   ;;  %vm146_vm2 = vcmask 195584   ;;  %v122_v45 = vshrl.u32 %v121_v44, 7 }
  0x31   :  { %378 = vmatpush1.bf16.msra.mxu1 %v530_v13  ;;  %v71_v36 = vld [vmem:[%s736_s0] sm:$0x3]  ;;  %v564_v40 = vld [vmem:[#allocation8 + $0x94] ss:$8 sps:$4 sm:$0xff]   ;;  %v566_v41 = vld [vmem:[#allocation8 + $0x90] ss:$8 sps:$4 sm:$0xff]  }
  0x32   :  { %379 = vmatprep.subr.bf16.mxu1 %v531_v14  ;;  %v567_v42 = vld [vmem:[#allocation8 + $0x84] ss:$8 sps:$4 sm:$0xff]   ;;  %v569_v43 = vld [vmem:[#allocation8 + $0x80] ss:$8 sps:$4 sm:$0xff]   ;;  %v123_v46 = vsub.s32 0, %v122_v45  ;;  %v127_v48 = vsub.s32 1, %v122_v45 }
  0x33   :  { %v83_v47 = vld [vmem:[%s739_s3] sm:$0x3]  ;;  %v423_v0 = vsub.s32 2, %v122_v45  ;;  %vm437_vm3 = vcmask 1041408   ;;  %s663_s26 = smov [#allocation9]   ;;  %vm453_vm4 = vcmask 8192  }
  0x34   :  { %v124_v49 = vrot.slane %v83_v47, %v123_v46  ;;  %v128_v50 = vrot.slane %v83_v47, %v127_v48  ;;  %v117_v61 = vld [vmem:[%s742_s6] sm:$0x3]  ;;  %s461_s27 = sshll.u32 %s663_s26, 4  ;;  %s462_s27 = int_to_ptr.vmem [resolvable:$true] %s461_s27 }
  0x35   :  { %380 = vmatpush1.bf16.msra.mxu1 %v533_v15  ;;  %v118_v62 = vunpack.c.l.bf16 %v117_v61  ;;  %v116_v63 = vld [vmem:[%s741_s5] sm:$0x3]  ;;  %s630_s28 = scalar_lea.vmem %s462_s27, 16  ;;  %s634_s29 = scalar_lea.vmem %s462_s27, 32 }
  0x36   :  { %381 = vmatprep.subr.bf16.mxu1 %v534_v16  ;;  %v206_v1 = vrot.slane %v116_v63, %v123_v46  ;;  %v210_v3 = vrot.slane %v116_v63, %v127_v48  ;;  %p631_p1 = scmp.ne.s32.totalorder %s462_s27, %s630_s28  ;;  %p635_p2 = scmp.lt.s32.totalorder %s462_s27, %s462_s27 }
  0x37   :  { %v420_v2 = vrot.slane %v118_v62, %v123_v46  ;;  %v424_v4 = vrot.slane %v118_v62, %v423_v0  ;;  %p636_p3 = scmp.lt.s32.totalorder %s634_s29, %s630_s28 }
  0x39   :  { %382 = vmatpush1.bf16.msra.mxu1 %v536_v17  ;;  %v430_v7 = vrot.slane %v420_v2, %v123_v46  ;;  %v434_v11 = vrot.slane %v424_v4, %v123_v46  ;;  %p637_p4 = por %p636_p3, %p635_p2 }
  0x3a   :  { %383 = vmatprep.subr.bf16.mxu1 %v537_v18 }
  0x3b   :  { %p638_p5 = pnand %p637_p4, %p631_p1 }
  0x3d   :  { %384 = vmatpush1.bf16.msra.mxu1 %v539_v19 }
  0x3e   :  { %385 = vmatprep.subr.bf16.mxu1 %v540_v20  ;;  %v447_v20 = vand.u32 127, %v121_v44 }
  0x41   :  { %386 = vmatpush1.bf16.msra.mxu1 %v542_v21  ;;  %v443_v21 = vstv %s743_s7 }
  0x42   :  { %387 = vmatprep.subr.bf16.mxu1 %v543_v22  ;;  %v450_v22 = vsub.s32 %v447_v20, %v122_v45 }
  0x45   :  { %388 = vmatpush1.bf16.msra.mxu1 %v545_v23 }
  0x46   :  { %389 = vmatprep.subr.bf16.mxu1 %v546_v24 }
  0x49   :  { %390 = vmatpush2.bf16.msra.mxu1 %v548_v25 }
  0x4a   :  { %391 = vmatprep.subr.bf16.mxu1 %v549_v26 }
  0x4d   :  { %392 = vmatpush2.bf16.msra.mxu1 %v551_v27 }
  0x4e   :  { %393 = vmatprep.subr.bf16.mxu1 %v552_v28 }
  0x51   :  { %394 = vmatpush2.bf16.msra.mxu1 %v554_v29 }
  0x52   :  { %395 = vmatprep.subr.bf16.mxu1 %v555_v30 }
  0x55   :  { %396 = vmatpush2.bf16.msra.mxu1 %v557_v31 }
  0x56   :  { %397 = vmatprep.subr.bf16.mxu1 %v558_v32 }
  0x59   :  { %398 = vmatpush2.bf16.msra.mxu1 %v560_v33 }
  0x5a   :  { %399 = vmatprep.subr.bf16.mxu1 %v561_v34 }
  0x5d   :  { %400 = vmatpush2.bf16.msra.mxu1 %v563_v35 }
  0x5e   :  { %401 = vmatprep.subr.bf16.mxu1 %v564_v40 }
  0x61   :  { %402 = vmatpush2.bf16.msra.mxu1 %v566_v41 }
  0x62   :  { %403 = vmatprep.subr.bf16.mxu1 %v567_v42 }
  0x65   :  { %404 = vmatpush2.bf16.msra.mxu1 %v569_v43 }
  0x99   :  { %v75_v37 = vpop.permute.xlu0 %74 }
  0x9a   :  { %v78_v38 = vsel %vm77_vm1, %v71_v36, %v75_v37 }
  0x9b   :  { %v79_v39 = vpack.c.bf16 %v78_v38, %v78_v38 }
  0x9d   :  { %476 = vmatmul.mubr.msk.bf16.vlgmr.msra.gmra.mxu0 %vm146_vm2, %v79_v39 }
 0x15d   :  { %v191_v51 = vpop.f32.mrf.mxu0 }
 0x15e   :  { %v192_v52 = vadd.f32 %v191_v51, %v124_v49 }
 0x15f   :  { %v193_v53 = vpop.f32.mrf.mxu0 }
 0x160   :  { %v194_v54 = vadd.f32 %v193_v53, %v128_v50  ;;  %v198_v55 = vmax.f32 %v192_v52, 0.0 }
 0x161   :  { %v195_v56 = vpop.f32.mrf.mxu0 }
 0x162   :  { %v199_v57 = vmax.f32 %v194_v54, 0.0  ;;  %v200_v60 = vpack.c.bf16 %v198_v55, %v198_v55 }
 0x163   :  { %v196_v58 = vpop.f32.mrf.mxu0 }
 0x164   :  { %v201_v59 = vpack.c.bf16 %v199_v57, %v199_v57 }
 0x166   :  { %405 = vmatprep.mubr.bf16.mxu1 %v201_v59 }
 0x167   :  { %406 = vmatmul.mubr.bf16.vlgmr.msra.gmra.mxu1 %v200_v60 }
 0x227   :  { %v407_v5 = vpop.f32.mrf.mxu1 }
 0x228   :  { %v408_v6 = vadd.f32 %v407_v5, %v206_v1 }
 0x229   :  { %v409_v8 = vpop.f32.mrf.mxu1 }
 0x22a   :  { %v414_v9 = vmax.f32 %v408_v6, 0.0  ;;  %v410_v10 = vadd.f32 %v409_v8, %v210_v3 }
 0x22b   :  { %v411_v12 = vpop.f32.mrf.mxu1 }
 0x22c   :  { %v435_v13 = vmul.f32 %v430_v7, %v414_v9  ;;  %v415_v14 = vmax.f32 %v410_v10, 0.0 }
 0x22d   :  { %v412_v15 = vpop.f32.mrf.mxu1 }
 0x22e   :  { %v436_v16 = vmul.f32 %v434_v11, %v415_v14  ;;  %v438_v17 = vsel %vm437_vm3, %v435_v13, 0.0 }
 0x230   :  { %v439_v18 = vsel %vm437_vm3, %v436_v16, 0.0 }
 0x231   :  { %v440_v19 = vadd.f32 %v439_v18, %v438_v17 }
 0x233   :  { %441 = vadd.xlane.f32.xlu0 %v440_v19 }
 0x2bc   :  { %v442_v23 = vpop.xlane.xlu0 %441 }
 0x2bd   :  { %v444_v24 = vadd.f32 %v443_v21, %v442_v23 }
 0x2bf   :  { %v451_v25 = vrot.slane %v444_v24, %v450_v22 }
 0x2c1   :  { %454 = vst.msk [vmem:[#allocation9] sm:$0x1] %vm453_vm4, %v451_v25 }
 0x2c2   :  { %641 = shalt.err (!%p638_p5)
}
 0x2c3   :  { %464 = dma.vmem_to_hbm [thread:$0]  %s462_s27, 16, %s744_s8, [#allocation5]  }
 0x2c4   :  { %654 = dma.done.wait [#allocation5], 16  }
 0x2c5   :  { %655 = vsyncadd [#allocation5], 4294967280 }
 0x2c6   :  { %468 = vsyncpa [#allocation4], 1 }
 0x2c7   :  { %469 = vsyncpa [#allocation7], 1 }
 0x2c8   :  { %470 = vsyncpa [#allocation5], 1 }

</bundles_post_ra>
